<compile_context>
chip_gen: v7x
topology: tpu7x:2x2x1
jax: 0.10.0
libtpu: 0.0.40
codegen_flags: <defaults>
</compile_context>

<pallas_src>
import jax
import jax.numpy as jnp
from jax.experimental import pallas as pl
from jax.experimental.pallas import tpu as pltpu


# ----------------------------- in-kernel helpers -----------------------------

def _silu(x):
    # sigmoid via EUP exp + approximate EUP reciprocal (keeps the VALU free).
    return x * pl.reciprocal(1.0 + jnp.exp(-x), approx=True)


def _irb_kernel(
    x_ref,        # (1, in_ch, tL)   input tile (channels on sublane, L on lane)
    w1t_ref,      # (mid_ch, in_ch)  conv1 weight, transposed
    midv_ref,     # (mid_ch, 6)      packed: [s1, b1, dw, s2, b2, se_b2]
    sew1t_ref,    # (sq_ch, mid_ch)  SE conv1 weight, transposed
    seb1_ref,     # (sq_ch, 1)       SE conv1 bias
    sew2t_ref,    # (mid_ch, sq_ch)  SE conv2 weight, transposed
    w5t_ref,      # (out_ch, mid_ch) conv5 weight, transposed
    outv_ref,     # (out_ch, 3)      packed: [s3, b3, bd]
    wdt_ref,      # (out_ch, in_ch)  downsample weight, transposed
    o_ref,        # (1, out_ch, tL)
):
    x = x_ref[0]                                      # (in_ch, tL), compute dtype

    midv = midv_ref[...].astype(jnp.float32)          # (mid_ch, 6)
    s1, b1 = midv[:, 0:1], midv[:, 1:2]
    dw = midv[:, 2:3]
    s2, b2 = midv[:, 3:4], midv[:, 4:5]
    se_b2 = midv[:, 5:6]
    outv = outv_ref[...].astype(jnp.float32)          # (out_ch, 3)
    s3, b3, bd = outv[:, 0:1], outv[:, 1:2], outv[:, 2:3]

    # conv1 (1x1) -> bn1 -> SiLU
    h = jnp.dot(w1t_ref[...], x, preferred_element_type=jnp.float32)
    h = h * s1 + b1
    h = _silu(h)

    # conv2: depthwise 1x1 (groups=mid_ch) -> bn2   (folded into one scale/shift)
    h = h * (dw * s2) + b2

    # SqueezeExcite: 1x1 conv -> SiLU -> 1x1 conv, residual add
    se = jnp.dot(sew1t_ref[...], h.astype(sew1t_ref.dtype),
                 preferred_element_type=jnp.float32)
    se = _silu(se + seb1_ref[...].astype(jnp.float32))
    se = jnp.dot(sew2t_ref[...], se.astype(sew2t_ref.dtype),
                 preferred_element_type=jnp.float32) + se_b2
    h = h + se

    # conv5 (1x1) -> bn3
    out = jnp.dot(w5t_ref[...], h.astype(w5t_ref.dtype),
                  preferred_element_type=jnp.float32)
    out = out * s3 + b3

    # downsample identity path (1x1 conv with bias)
    out = out + jnp.dot(wdt_ref[...], x, preferred_element_type=jnp.float32) + bd

    o_ref[0] = _silu(out).astype(o_ref.dtype)


# ------------------------------- host wrapper --------------------------------

def _default_vmem_limit():
    """Scoped-VMEM budget: ~75% of physical, capped at 100 MiB.

    v5e/v6e physical = 128 MiB -> ~96-100 MiB; v7x physical = 64 MiB -> 48 MiB.
    """
    phys = 128 << 20
    try:
        info = pltpu.get_tpu_info()
        phys = int(getattr(info, "vmem_capacity_bytes", phys))
    except Exception:
        pass
    return min(int(phys * 3 // 4), 100 << 20)


def _pick_tl(tl_req, L, in_ch, mid_ch, sq_ch, out_ch, in_bytes, vmem_limit_bytes):
    """Largest lane-tile (multiple of 128) that fits the VMEM budget and L."""
    # Per-lane-column cost: double-buffered x/out blocks + live f32 temporaries.
    per_col = (2 * (in_ch + out_ch) * in_bytes
               + 4 * (in_ch + 3 * mid_ch + sq_ch + 2 * out_ch))
    budget = int(vmem_limit_bytes * 0.5)              # headroom for weights/regalloc
    max_tl = max(128, (budget // max(per_col, 1)) // 128 * 128)
    tl = min(int(tl_req), max_tl)
    tl = min(tl, pl.cdiv(L, 128) * 128)               # never wider than padded L
    return max(128, tl // 128 * 128)


def inverted_residual_block(x, params, *, tl=1024, compute_dtype=None,
                            vmem_limit_bytes=None):
    """x: (B, in_ch, L) NCL like PyTorch Conv1d.  Returns (B, out_ch, L)."""
    B, in_ch, L = x.shape
    mid_ch = params["w1"].shape[1]
    sq_ch = params["se_w1"].shape[1]
    out_ch = params["w5"].shape[1]
    out_dtype = x.dtype
    cdt = jnp.dtype(compute_dtype) if compute_dtype is not None else jnp.dtype(x.dtype)

    if vmem_limit_bytes is None:
        vmem_limit_bytes = _default_vmem_limit()
    tl = _pick_tl(tl, L, in_ch, mid_ch, sq_ch, out_ch, cdt.itemsize,
                  vmem_limit_bytes)

    # Ragged L: pad spatial dim up to a multiple of the lane tile, slice after.
    Lp = pl.cdiv(L, tl) * tl
    xp = x if Lp == L else jnp.pad(x, ((0, 0), (0, 0), (0, Lp - L)))
    xp = xp.astype(cdt)

    f32 = jnp.float32

    # Transposed matmul weights (output channels on sublanes), compute dtype.
    w1t = params["w1"].T.astype(cdt)        # (mid_ch, in_ch)
    sew1t = params["se_w1"].T.astype(cdt)   # (sq_ch, mid_ch)
    sew2t = params["se_w2"].T.astype(cdt)   # (mid_ch, sq_ch)
    w5t = params["w5"].T.astype(cdt)        # (out_ch, mid_ch)
    wdt = params["wd"].T.astype(cdt)        # (out_ch, in_ch)

    # Pack the tiny per-channel vectors into column tables (fewer DMA descriptors).
    def col(v):
        return v.reshape(-1).astype(f32)

    midv = jnp.stack(
        [col(params["s1"]), col(params["b1"]), col(params["dw"]),
         col(params["s2"]), col(params["b2"]), col(params["se_b2"])],
        axis=1)                                        # (mid_ch, 6)
    outv = jnp.stack(
        [col(params["s3"]), col(params["b3"]), col(params["bd"])],
        axis=1)                                        # (out_ch, 3)
    seb1 = params["se_b1"].reshape(-1, 1).astype(f32)  # (sq_ch, 1)

    weights = [w1t, midv, sew1t, seb1, sew2t, w5t, outv, wdt]

    grid = (B, Lp // tl)                               # >= 2 steps for megacore

    out = pl.pallas_call(
        _irb_kernel,
        out_shape=jax.ShapeDtypeStruct((B, out_ch, Lp), out_dtype),
        grid=grid,
        in_specs=[pl.BlockSpec((1, in_ch, tl), lambda b, l: (b, 0, l))]
        + [pl.BlockSpec(w.shape, lambda b, l: (0, 0)) for w in weights],
        out_specs=pl.BlockSpec((1, out_ch, tl), lambda b, l: (b, 0, l)),
        compiler_params=pltpu.CompilerParams(
            dimension_semantics=("parallel", "parallel"),
            vmem_limit_bytes=int(vmem_limit_bytes)),
    )(xp, *weights)

    return out[:, :, :L] if Lp != L else out


# ----------------------------- params & reference ----------------------------

def _fold_bn(gamma, beta, mean, var, eps=1e-5):
    scale = gamma / jnp.sqrt(var + eps)
    shift = beta - mean * scale
    return scale[None, :], shift[None, :]


def make_params(key, in_ch, mid_ch, sq_ch, out_ch, dtype=jnp.float32):
    ks = jax.random.split(key, 12)

    def rnd(k, shape, scale=0.2):
        return (scale * jax.random.normal(k, shape)).astype(dtype)

    # BN params: deterministic, non-trivial (inference mode / running stats).
    def bn(k, ch):
        k1, k2, k3, k4 = jax.random.split(k, 4)
        gamma = 1.0 + 0.1 * jax.random.normal(k1, (ch,))
        beta = 0.1 * jax.random.normal(k2, (ch,))
        mean = 0.1 * jax.random.normal(k3, (ch,))
        var = 1.0 + 0.1 * jax.random.uniform(k4, (ch,))
        s, b = _fold_bn(gamma, beta, mean, var)
        return s.astype(dtype), b.astype(dtype)

    s1, b1 = bn(ks[0], mid_ch)
    s2, b2 = bn(ks[1], mid_ch)
    s3, b3 = bn(ks[2], out_ch)

    return {
        "w1": rnd(ks[3], (in_ch, mid_ch)),        # conv1 (1x1, no bias)
        "s1": s1, "b1": b1,
        "dw": rnd(ks[4], (1, mid_ch)),            # depthwise 1x1 conv weight
        "s2": s2, "b2": b2,
        "se_w1": rnd(ks[5], (mid_ch, sq_ch)),     # SE conv1
        "se_b1": rnd(ks[6], (1, sq_ch)),
        "se_w2": rnd(ks[7], (sq_ch, mid_ch)),     # SE conv2
        "se_b2": rnd(ks[8], (1, mid_ch)),
        "w5": rnd(ks[9], (mid_ch, out_ch)),       # conv5 (1x1, no bias)
        "s3": s3, "b3": b3,
        "wd": rnd(ks[10], (in_ch, out_ch)),       # downsample conv
        "bd": rnd(ks[11], (1, out_ch)),
    }


def reference(x, p):
    """Pure-JAX reference matching the PyTorch forward (inference-mode BN)."""
    def silu(v):
        return v * jax.nn.sigmoid(v)

    xm = jnp.transpose(x, (0, 2, 1))  # (B, L, C)
    h = xm @ p["w1"]
    h = h * p["s1"] + p["b1"]
    h = silu(h)
    h = h * p["dw"]
    h = h * p["s2"] + p["b2"]
    se = silu(h @ p["se_w1"] + p["se_b1"]) @ p["se_w2"] + p["se_b2"]
    h = h + se
    out = h @ p["w5"]
    out = out * p["s3"] + p["b3"]
    out = out + (xm @ p["wd"] + p["bd"])
    out = silu(out)
    return jnp.transpose(out, (0, 2, 1))


# ------------------------------------ main ------------------------------------

if __name__ == "__main__":
    B, in_ch, L = 2, 4, 16
    mid_ch, sq_ch, out_ch = 8, 4, 4

    key = jax.random.PRNGKey(0)
    kx, kp = jax.random.split(key)
    x = jax.random.normal(kx, (B, in_ch, L), dtype=jnp.float32)
    params = make_params(kp, in_ch, mid_ch, sq_ch, out_ch)

    ref = reference(x, params)

    # f32 matmul operands (default).
    out = jax.block_until_ready(inverted_residual_block(x, params))
    assert out.shape == (B, out_ch, L)
    assert jnp.allclose(out, ref, atol=5e-3, rtol=5e-3), \
        float(jnp.max(jnp.abs(out - ref)))

    # bf16 matmul operands (MXU-peak path on v5e/v6e/v7x), looser tolerance.
    out_bf16 = jax.block_until_ready(
        inverted_residual_block(x, params, compute_dtype=jnp.bfloat16))
    assert out_bf16.shape == (B, out_ch, L)
    assert jnp.allclose(out_bf16, ref, atol=5e-2, rtol=5e-2), \
        float(jnp.max(jnp.abs(out_bf16 - ref)))

    print("KERNEL_OK")
</pallas_src>

<mosaic_0001>
module attributes {stable_mosaic.version = 11 : i64} {
  func.func @_irb_kernel(%arg0: i32, %arg1: i32, %arg2: memref<1x4x128xf32, #tpu.memory_space<vmem>>, %arg3: memref<8x4xf32, #tpu.memory_space<vmem>>, %arg4: memref<8x6xf32, #tpu.memory_space<vmem>>, %arg5: memref<4x8xf32, #tpu.memory_space<vmem>>, %arg6: memref<4x1xf32, #tpu.memory_space<vmem>>, %arg7: memref<8x4xf32, #tpu.memory_space<vmem>>, %arg8: memref<4x8xf32, #tpu.memory_space<vmem>>, %arg9: memref<4x3xf32, #tpu.memory_space<vmem>>, %arg10: memref<4x4xf32, #tpu.memory_space<vmem>>, %arg11: memref<1x4x128xf32, #tpu.memory_space<vmem>>) attributes {dimension_semantics = [#tpu.dimension_semantics<parallel>, #tpu.dimension_semantics<parallel>], iteration_bounds = array<i64: 2, 1>, scalar_prefetch = 0 : i64, scratch_operands = 0 : i64, tpu.core_type = #tpu.core_type<tc>, window_params = [{transform_indices = @transform_0, window_bounds = array<i64: 1, 4, 128>}, {pipeline_mode = #tpu.pipeline_mode<synchronous>, transform_indices = @transform_1, window_bounds = array<i64: 8, 4>}, {pipeline_mode = #tpu.pipeline_mode<synchronous>, transform_indices = @transform_2, window_bounds = array<i64: 8, 6>}, {pipeline_mode = #tpu.pipeline_mode<synchronous>, transform_indices = @transform_3, window_bounds = array<i64: 4, 8>}, {pipeline_mode = #tpu.pipeline_mode<synchronous>, transform_indices = @transform_4, window_bounds = array<i64: 4, 1>}, {pipeline_mode = #tpu.pipeline_mode<synchronous>, transform_indices = @transform_5, window_bounds = array<i64: 8, 4>}, {pipeline_mode = #tpu.pipeline_mode<synchronous>, transform_indices = @transform_6, window_bounds = array<i64: 4, 8>}, {pipeline_mode = #tpu.pipeline_mode<synchronous>, transform_indices = @transform_7, window_bounds = array<i64: 4, 3>}, {pipeline_mode = #tpu.pipeline_mode<synchronous>, transform_indices = @transform_8, window_bounds = array<i64: 4, 4>}, {transform_indices = @transform_9, window_bounds = array<i64: 1, 4, 128>}]} {
    %c0 = arith.constant 0 : index
    %c0_0 = arith.constant 0 : index
    %c0_1 = arith.constant 0 : index
    %0 = vector.load %arg2[%c0, %c0_0, %c0_1] : memref<1x4x128xf32, #tpu.memory_space<vmem>>, vector<1x4x128xf32>
    %1 = vector.shape_cast %0 : vector<1x4x128xf32> to vector<4x128xf32>
    %c0_2 = arith.constant 0 : index
    %c0_3 = arith.constant 0 : index
    %2 = vector.load %arg4[%c0_2, %c0_3] : memref<8x6xf32, #tpu.memory_space<vmem>>, vector<8x6xf32>
    %3 = vector.extract_strided_slice %2 {offsets = [0, 0], sizes = [8, 1], strides = [1, 1]} : vector<8x6xf32> to vector<8x1xf32>
    %4 = vector.extract_strided_slice %2 {offsets = [0, 1], sizes = [8, 1], strides = [1, 1]} : vector<8x6xf32> to vector<8x1xf32>
    %5 = vector.extract_strided_slice %2 {offsets = [0, 2], sizes = [8, 1], strides = [1, 1]} : vector<8x6xf32> to vector<8x1xf32>
    %6 = vector.extract_strided_slice %2 {offsets = [0, 3], sizes = [8, 1], strides = [1, 1]} : vector<8x6xf32> to vector<8x1xf32>
    %7 = vector.extract_strided_slice %2 {offsets = [0, 4], sizes = [8, 1], strides = [1, 1]} : vector<8x6xf32> to vector<8x1xf32>
    %8 = vector.extract_strided_slice %2 {offsets = [0, 5], sizes = [8, 1], strides = [1, 1]} : vector<8x6xf32> to vector<8x1xf32>
    %c0_4 = arith.constant 0 : index
    %c0_5 = arith.constant 0 : index
    %9 = vector.load %arg9[%c0_4, %c0_5] : memref<4x3xf32, #tpu.memory_space<vmem>>, vector<4x3xf32>
    %10 = vector.extract_strided_slice %9 {offsets = [0, 0], sizes = [4, 1], strides = [1, 1]} : vector<4x3xf32> to vector<4x1xf32>
    %11 = vector.extract_strided_slice %9 {offsets = [0, 1], sizes = [4, 1], strides = [1, 1]} : vector<4x3xf32> to vector<4x1xf32>
    %12 = vector.extract_strided_slice %9 {offsets = [0, 2], sizes = [4, 1], strides = [1, 1]} : vector<4x3xf32> to vector<4x1xf32>
    %c0_6 = arith.constant 0 : index
    %c0_7 = arith.constant 0 : index
    %13 = vector.load %arg3[%c0_6, %c0_7] : memref<8x4xf32, #tpu.memory_space<vmem>>, vector<8x4xf32>
    %cst = arith.constant dense<0.000000e+00> : vector<8x128xf32>
    %14 = tpu.matmul %13, %1, %cst {dimension_numbers = #tpu.dot_dimension_numbers<[1], [0], [0], [1], [0, 0, 1, 1], [], []>} : vector<8x4xf32>, vector<4x128xf32>, vector<8x128xf32> -> vector<8x128xf32>
    %15 = vector.broadcast %3 : vector<8x1xf32> to vector<8x128xf32>
    %16 = arith.mulf %14, %15 : vector<8x128xf32>
    %17 = vector.broadcast %4 : vector<8x1xf32> to vector<8x128xf32>
    %18 = arith.addf %16, %17 : vector<8x128xf32>
    %cst_8 = arith.constant 0.000000e+00 : f32
    %19 = vector.broadcast %cst_8 : f32 to vector<8x128xf32>
    %20 = arith.subf %19, %18 : vector<8x128xf32>
    %21 = math.exp %20 : vector<8x128xf32>
    %cst_9 = arith.constant 1.000000e+00 : f32
    %22 = vector.broadcast %cst_9 : f32 to vector<8x128xf32>
    %23 = arith.addf %22, %21 : vector<8x128xf32>
    %24 = tpu.reciprocal %23 {approx = true} : vector<8x128xf32> -> vector<8x128xf32>
    %25 = arith.mulf %18, %24 : vector<8x128xf32>
    %26 = arith.mulf %5, %6 : vector<8x1xf32>
    %27 = vector.broadcast %26 : vector<8x1xf32> to vector<8x128xf32>
    %28 = arith.mulf %25, %27 : vector<8x128xf32>
    %29 = vector.broadcast %7 : vector<8x1xf32> to vector<8x128xf32>
    %30 = arith.addf %28, %29 : vector<8x128xf32>
    %c0_10 = arith.constant 0 : index
    %c0_11 = arith.constant 0 : index
    %31 = vector.load %arg5[%c0_10, %c0_11] : memref<4x8xf32, #tpu.memory_space<vmem>>, vector<4x8xf32>
    %cst_12 = arith.constant dense<0.000000e+00> : vector<4x128xf32>
    %32 = tpu.matmul %31, %30, %cst_12 {dimension_numbers = #tpu.dot_dimension_numbers<[1], [0], [0], [1], [0, 0, 1, 1], [], []>} : vector<4x8xf32>, vector<8x128xf32>, vector<4x128xf32> -> vector<4x128xf32>
    %c0_13 = arith.constant 0 : index
    %c0_14 = arith.constant 0 : index
    %33 = vector.load %arg6[%c0_13, %c0_14] : memref<4x1xf32, #tpu.memory_space<vmem>>, vector<4x1xf32>
    %34 = vector.broadcast %33 : vector<4x1xf32> to vector<4x128xf32>
    %35 = arith.addf %32, %34 : vector<4x128xf32>
    %cst_15 = arith.constant 0.000000e+00 : f32
    %36 = vector.broadcast %cst_15 : f32 to vector<4x128xf32>
    %37 = arith.subf %36, %35 : vector<4x128xf32>
    %38 = math.exp %37 : vector<4x128xf32>
    %cst_16 = arith.constant 1.000000e+00 : f32
    %39 = vector.broadcast %cst_16 : f32 to vector<4x128xf32>
    %40 = arith.addf %39, %38 : vector<4x128xf32>
    %41 = tpu.reciprocal %40 {approx = true} : vector<4x128xf32> -> vector<4x128xf32>
    %42 = arith.mulf %35, %41 : vector<4x128xf32>
    %c0_17 = arith.constant 0 : index
    %c0_18 = arith.constant 0 : index
    %43 = vector.load %arg7[%c0_17, %c0_18] : memref<8x4xf32, #tpu.memory_space<vmem>>, vector<8x4xf32>
    %cst_19 = arith.constant dense<0.000000e+00> : vector<8x128xf32>
    %44 = tpu.matmul %43, %42, %cst_19 {dimension_numbers = #tpu.dot_dimension_numbers<[1], [0], [0], [1], [0, 0, 1, 1], [], []>} : vector<8x4xf32>, vector<4x128xf32>, vector<8x128xf32> -> vector<8x128xf32>
    %45 = vector.broadcast %8 : vector<8x1xf32> to vector<8x128xf32>
    %46 = arith.addf %44, %45 : vector<8x128xf32>
    %47 = arith.addf %30, %46 : vector<8x128xf32>
    %c0_20 = arith.constant 0 : index
    %c0_21 = arith.constant 0 : index
    %48 = vector.load %arg8[%c0_20, %c0_21] : memref<4x8xf32, #tpu.memory_space<vmem>>, vector<4x8xf32>
    %cst_22 = arith.constant dense<0.000000e+00> : vector<4x128xf32>
    %49 = tpu.matmul %48, %47, %cst_22 {dimension_numbers = #tpu.dot_dimension_numbers<[1], [0], [0], [1], [0, 0, 1, 1], [], []>} : vector<4x8xf32>, vector<8x128xf32>, vector<4x128xf32> -> vector<4x128xf32>
    %50 = vector.broadcast %10 : vector<4x1xf32> to vector<4x128xf32>
    %51 = arith.mulf %49, %50 : vector<4x128xf32>
    %52 = vector.broadcast %11 : vector<4x1xf32> to vector<4x128xf32>
    %53 = arith.addf %51, %52 : vector<4x128xf32>
    %c0_23 = arith.constant 0 : index
    %c0_24 = arith.constant 0 : index
    %54 = vector.load %arg10[%c0_23, %c0_24] : memref<4x4xf32, #tpu.memory_space<vmem>>, vector<4x4xf32>
    %cst_25 = arith.constant dense<0.000000e+00> : vector<4x128xf32>
    %55 = tpu.matmul %54, %1, %cst_25 {dimension_numbers = #tpu.dot_dimension_numbers<[1], [0], [0], [1], [0, 0, 1, 1], [], []>} : vector<4x4xf32>, vector<4x128xf32>, vector<4x128xf32> -> vector<4x128xf32>
    %56 = arith.addf %53, %55 : vector<4x128xf32>
    %57 = vector.broadcast %12 : vector<4x1xf32> to vector<4x128xf32>
    %58 = arith.addf %56, %57 : vector<4x128xf32>
    %cst_26 = arith.constant 0.000000e+00 : f32
    %59 = vector.broadcast %cst_26 : f32 to vector<4x128xf32>
    %60 = arith.subf %59, %58 : vector<4x128xf32>
    %61 = math.exp %60 : vector<4x128xf32>
    %cst_27 = arith.constant 1.000000e+00 : f32
    %62 = vector.broadcast %cst_27 : f32 to vector<4x128xf32>
    %63 = arith.addf %62, %61 : vector<4x128xf32>
    %64 = tpu.reciprocal %63 {approx = true} : vector<4x128xf32> -> vector<4x128xf32>
    %65 = arith.mulf %58, %64 : vector<4x128xf32>
    %c0_28 = arith.constant 0 : index
    %c0_29 = arith.constant 0 : index
    %c0_30 = arith.constant 0 : index
    %66 = vector.load %arg11[%c0_28, %c0_29, %c0_30] : memref<1x4x128xf32, #tpu.memory_space<vmem>>, vector<1x4x128xf32>
    %67 = vector.shape_cast %66 : vector<1x4x128xf32> to vector<4x128xf32>
    %68 = vector.shape_cast %65 : vector<4x128xf32> to vector<1x4x128xf32>
    tpu.vector_store %arg11[%c0_28, %c0_29, %c0_30], %68 {strides = array<i32>} : memref<1x4x128xf32, #tpu.memory_space<vmem>>, vector<1x4x128xf32>,
    return
  }
  func.func @transform_0(%arg0: i32, %arg1: i32) -> (i32, i32, i32) {
    %c0_i32 = arith.constant 0 : i32
    %c0_i32_0 = arith.constant 0 : i32
    return %arg0, %c0_i32, %arg1 : i32, i32, i32
  }
  func.func @transform_1(%arg0: i32, %arg1: i32) -> (i32, i32) {
    %c0_i32 = arith.constant 0 : i32
    %c0_i32_0 = arith.constant 0 : i32
    %c0_i32_1 = arith.constant 0 : i32
    return %c0_i32, %c0_i32_0 : i32, i32
  }
  func.func @transform_2(%arg0: i32, %arg1: i32) -> (i32, i32) {
    %c0_i32 = arith.constant 0 : i32
    %c0_i32_0 = arith.constant 0 : i32
    %c0_i32_1 = arith.constant 0 : i32
    return %c0_i32, %c0_i32_0 : i32, i32
  }
  func.func @transform_3(%arg0: i32, %arg1: i32) -> (i32, i32) {
    %c0_i32 = arith.constant 0 : i32
    %c0_i32_0 = arith.constant 0 : i32
    %c0_i32_1 = arith.constant 0 : i32
    return %c0_i32, %c0_i32_0 : i32, i32
  }
  func.func @transform_4(%arg0: i32, %arg1: i32) -> (i32, i32) {
    %c0_i32 = arith.constant 0 : i32
    %c0_i32_0 = arith.constant 0 : i32
    %c0_i32_1 = arith.constant 0 : i32
    return %c0_i32, %c0_i32_0 : i32, i32
  }
  func.func @transform_5(%arg0: i32, %arg1: i32) -> (i32, i32) {
    %c0_i32 = arith.constant 0 : i32
    %c0_i32_0 = arith.constant 0 : i32
    %c0_i32_1 = arith.constant 0 : i32
    return %c0_i32, %c0_i32_0 : i32, i32
  }
  func.func @transform_6(%arg0: i32, %arg1: i32) -> (i32, i32) {
    %c0_i32 = arith.constant 0 : i32
    %c0_i32_0 = arith.constant 0 : i32
    %c0_i32_1 = arith.constant 0 : i32
    return %c0_i32, %c0_i32_0 : i32, i32
  }
  func.func @transform_7(%arg0: i32, %arg1: i32) -> (i32, i32) {
    %c0_i32 = arith.constant 0 : i32
    %c0_i32_0 = arith.constant 0 : i32
    %c0_i32_1 = arith.constant 0 : i32
    return %c0_i32, %c0_i32_0 : i32, i32
  }
  func.func @transform_8(%arg0: i32, %arg1: i32) -> (i32, i32) {
    %c0_i32 = arith.constant 0 : i32
    %c0_i32_0 = arith.constant 0 : i32
    %c0_i32_1 = arith.constant 0 : i32
    return %c0_i32, %c0_i32_0 : i32, i32
  }
  func.func @transform_9(%arg0: i32, %arg1: i32) -> (i32, i32, i32) {
    %c0_i32 = arith.constant 0 : i32
    %c0_i32_0 = arith.constant 0 : i32
    return %arg0, %c0_i32, %arg1 : i32, i32, i32
  }
}

</mosaic_0001>

<bundles_post_ra>
// kernel: tpu_custom_call.1
= control target key start
LH: loop header
LB: loop body
LE: loop exit
PB: predicated region body
PF: predicated region fallthrough
CT: control target
= control target key end

     0   :  { %s2158_s0 = inlined_call_operand.hbm [shape: f32[2,4,128], index: 0, kind: input, shape index: {}]   ;;  %s2159_s1 = inlined_call_operand.hbm [shape: f32[8,4], index: 1, kind: input, shape index: {}]   ;;  %s2160_s2 = inlined_call_operand.hbm [shape: f32[8,6], index: 2, kind: input, shape index: {}]   ;;  %s2161_s3 = inlined_call_operand.hbm [shape: f32[4,8], index: 3, kind: input, shape index: {}]   ;;  %s2162_s4 = inlined_call_operand.hbm [shape: f32[4,1], index: 4, kind: input, shape index: {}]   ;;  %s2163_s5 = inlined_call_operand.hbm [shape: f32[8,4], index: 5, kind: input, shape index: {}]   ;;  %s2164_s6 = inlined_call_operand.hbm [shape: f32[4,8], index: 6, kind: input, shape index: {}]   ;;  %s2165_s7 = inlined_call_operand.hbm [shape: f32[4,3], index: 7, kind: input, shape index: {}]   ;;  %s2166_s8 = inlined_call_operand.hbm [shape: f32[4,4], index: 8, kind: input, shape index: {}]   ;;  %s2167_s9 = inlined_call_operand.hbm [shape: f32[2,4,128], index: 9, kind: output, shape index: {}]  }
   0x1   :  { %2174 = sst [smem:[#allocation24_spill]] %s2159_s1 }
   0x2   :  { %2175 = sst [smem:[#allocation25_spill]] %s2160_s2 }
   0x3   :  { %2176 = sst [smem:[#allocation26_spill]] %s2161_s3 }
   0x4   :  { %2177 = sst [smem:[#allocation27_spill]] %s2167_s9 }
   0x5   :  { %14 = vsyncpa [#allocation3], 0 }
   0x6   :  { %16 = vsyncpa [#allocation3 + $0x1], 0 }
   0x7   :  { %17 = vsyncpa [#allocation6], 0 }
   0x8   :  { %18 = vsyncpa [#allocation9], 0 }
   0x9   :  { %19 = vsyncpa [#allocation12], 0 }
   0xa   :  { %20 = vsyncpa [#allocation15], 0 }
   0xb   :  { %21 = vsyncpa [#allocation4], 0 }
   0xc   :  { %23 = vsyncpa [#allocation4 + $0x1], 0  ;;  %s1755_s30 = smov 0   ;;  %s1757_s10 = smov 0  }
   0xd   :  { %s1759_s11 = smov 0   ;;  %s1761_s12 = smov 0  }
   0xe   :  { %s1763_s13 = smov 0   ;;  %s1765_s14 = smov 0  }
   0xf LB: > { %s2171_s15 = sadd.s32 4294967295, %s1685_s14   ;;  %p1093_p0 = scmp.ge.s32.totalorder %s1685_s14, 1  ;;  %s1685_s14 = sphi %s1765_s14, %s29_s14   ;;  %s1681_s13 = sphi %s1763_s13, %s2202_s13   ;;  %s1677_s12 = sphi %s1761_s12, %s2201_s12   ;;  %s1673_s11 = sphi %s1759_s11, %s2200_s11   ;;  %s1669_s10 = sphi %s1757_s10, %s2199_s10   ;;  %s1665_s30 = sphi %s1755_s30, %s2198_s30  }
  0x10   : > { %p1789_p1 = scmp.eq.s32.totalorder %s2171_s15, 0  ;;  %p270_p2 = scmp.lt.s32.totalorder %s1685_s14, 3 }
  0x11   : > { %s1687_s18 = smov [#allocation5]   ;;  %s1688_s20 = smov [#allocation8]  }
  0x12   : > { %s2178_s16 = scalar_select %p1789_p1, 1, 0 }
  0x13   : > { %p1794_p3 = pnand %p1093_p0, %p270_p2  ;;  %s283_s19 = sshll.u32 %s1687_s18, 4  ;;  %s284_s19 = int_to_ptr.vmem [resolvable:$true] %s283_s19 }
  0x14   : > { %s305_s21 = sshll.u32 %s1688_s20, 4  ;;  %s1689_s23 = smov [#allocation11]   ;;  %s1807_s21 = int_to_ptr.vmem [resolvable:$true] %s305_s21 }
  0x15   : > { %s2179_s17 = scalar_select %p1794_p3, 1, 0 }
  0x16   : > { %p1199_p5 = pneg %p1794_p3  ;;  %s327_s24 = sshll.u32 %s1689_s23, 4  ;;  %s1809_s24 = int_to_ptr.vmem [resolvable:$true] %s327_s24 }
  0x17   : > { %s2181_s1 = sld [smem:[#allocation24_spill]] }
  0x18   : > { %p1803_p6 = pnand %p1199_p5, %p1789_p1 }
  0x1a   : > { %p1819_p8 = pneg %p1803_p6 }
  0x1d   : > { %s1333_s27 = scalar_lea.hbm %s2181_s1, 128 }
  0x1e   : > { %p1334_p7 = scmp.ne.s32.totalorder %s2181_s1, %s1333_s27  ;;  %p1340_p11 = scmp.lt.u32.totalorder %s1333_s27, %s2181_s1 }
  0x20   : > { %p1336_p9 = pnand %p1819_p8, %p1334_p7 }
  0x22   : > { %p1337_p10 = pneg %p1336_p9 }
  0x24   : > { %p1342_p12 = pnand %p1340_p11, %p1337_p10 }
  0x26   : > { %1345 = shalt.err (!%p1342_p12)
}
  0x27   : > { %s1346_s25 = scalar_lea.vmem %s284_s19, 128  ;;  %p1354_p5 = scmp.lt.s32.totalorder %s284_s19, %s284_s19 }
  0x28   : > { %p1347_p13 = scmp.ne.s32.totalorder %s284_s19, %s1346_s25  ;;  %p1355_p4 = scmp.lt.s32.totalorder %s1346_s25, %s1346_s25 }
  0x2a   : > { %p1349_p0 = pnand %p1347_p13, %p1819_p8  ;;  %p1356_p3 = por %p1355_p4, %p1354_p5 }
  0x2c   : > { %p1350_p2 = pneg %p1349_p0 }
  0x2e   : > { %p1357_p1 = pnand %p1356_p3, %p1350_p2 }
  0x30   : > { %1360 = shalt.err (!%p1357_p1)
}
  0x31   : > { %1202 = dma.hbm_to_vmem [thread:$0]  (!%p1803_p6), %s2181_s1, 128, %s284_s19, [#allocation6]  }
  0x32   : > { %s2183_s3 = sld [smem:[#allocation26_spill]] }
  0x38   : > { %s1361_s20 = scalar_lea.hbm %s2183_s3, 64 }
  0x39   : > { %p1362_p7 = scmp.ne.s32.totalorder %s2183_s3, %s1361_s20  ;;  %p1368_p1 = scmp.lt.u32.totalorder %s1361_s20, %s2183_s3 }
  0x3b   : > { %p1364_p9 = pnand %p1362_p7, %p1819_p8 }
  0x3d   : > { %p1365_p4 = pneg %p1364_p9 }
  0x3f   : > { %p1370_p3 = pnand %p1368_p1, %p1365_p4 }
  0x41   : > { %1373 = shalt.err (!%p1370_p3)
}
  0x42   : > { %s1374_s19 = scalar_lea.vmem %s1807_s21, 64  ;;  %p1382_p13 = scmp.lt.s32.totalorder %s1807_s21, %s1807_s21 }
  0x43   : > { %p1375_p10 = scmp.ne.s32.totalorder %s1807_s21, %s1374_s19  ;;  %p1383_p0 = scmp.lt.s32.totalorder %s1374_s19, %s1374_s19 }
  0x45   : > { %p1377_p11 = pnand %p1375_p10, %p1819_p8  ;;  %p1384_p2 = por %p1383_p0, %p1382_p13 }
  0x47   : > { %p1378_p12 = pneg %p1377_p11 }
  0x49   : > { %p1385_p5 = pnand %p1384_p2, %p1378_p12 }
  0x4b   : > { %1388 = shalt.err (!%p1385_p5)
}
  0x4c   : > { %1208 = dma.hbm_to_vmem [thread:$0]  (!%p1803_p6), %s2183_s3, 64, %s1807_s21, [#allocation9]  }
  0x4d   : > { %s1389_s27 = scalar_lea.hbm %s2163_s5, 128 }
  0x4e   : > { %p1390_p7 = scmp.ne.s32.totalorder %s2163_s5, %s1389_s27  ;;  %p1396_p1 = scmp.lt.u32.totalorder %s1389_s27, %s2163_s5 }
  0x50   : > { %p1392_p9 = pnand %p1390_p7, %p1819_p8 }
  0x52   : > { %p1393_p4 = pneg %p1392_p9 }
  0x54   : > { %p1398_p3 = pnand %p1396_p1, %p1393_p4 }
  0x56   : > { %1401 = shalt.err (!%p1398_p3)
}
  0x57   : > { %s1402_s21 = scalar_lea.vmem %s1809_s24, 128  ;;  %p1410_p13 = scmp.lt.s32.totalorder %s1809_s24, %s1809_s24 }
  0x58   : > { %p1403_p10 = scmp.ne.s32.totalorder %s1809_s24, %s1402_s21  ;;  %p1411_p0 = scmp.lt.s32.totalorder %s1402_s21, %s1402_s21 }
  0x5a   : > { %p1405_p11 = pnand %p1403_p10, %p1819_p8  ;;  %p1412_p2 = por %p1411_p0, %p1410_p13 }
  0x5c   : > { %p1406_p12 = pneg %p1405_p11 }
  0x5e   : > { %p1413_p5 = pnand %p1412_p2, %p1406_p12 }
  0x60   : > { %1416 = shalt.err (!%p1413_p5)
}
  0x61   : > { %1214 = dma.hbm_to_vmem [thread:$0]  (!%p1803_p6), %s2163_s5, 128, %s1809_s24, [#allocation12]  }
  0x62   : > { %s1690_s15 = smov [#allocation14]   ;;  %s1691_s28 = smov [#allocation7]  }
  0x63   : > { %s349_s26 = sshll.u32 %s1690_s15, 4  ;;  %s294_s27 = sshll.u32 %s1691_s28, 4  ;;  %s350_s26 = int_to_ptr.vmem [resolvable:$true] %s349_s26  ;;  %s295_s27 = int_to_ptr.vmem [resolvable:$true] %s294_s27 }
  0x64   : > { %s1417_s23 = scalar_lea.hbm %s2165_s7, 64 }
  0x65   : > { %p1418_p7 = scmp.ne.s32.totalorder %s2165_s7, %s1417_s23  ;;  %p1424_p1 = scmp.lt.u32.totalorder %s1417_s23, %s2165_s7 }
  0x67   : > { %p1420_p9 = pnand %p1418_p7, %p1819_p8 }
  0x69   : > { %p1421_p4 = pneg %p1420_p9 }
  0x6b   : > { %p1426_p3 = pnand %p1424_p1, %p1421_p4 }
  0x6d   : > { %1429 = shalt.err (!%p1426_p3)
}
  0x6e   : > { %s1430_s24 = scalar_lea.vmem %s350_s26, 64  ;;  %p1438_p13 = scmp.lt.s32.totalorder %s350_s26, %s350_s26 }
  0x6f   : > { %p1431_p10 = scmp.ne.s32.totalorder %s350_s26, %s1430_s24  ;;  %p1439_p0 = scmp.lt.s32.totalorder %s1430_s24, %s1430_s24 }
  0x71   : > { %p1433_p11 = pnand %p1431_p10, %p1819_p8  ;;  %p1440_p2 = por %p1439_p0, %p1438_p13 }
  0x73   : > { %p1434_p12 = pneg %p1433_p11 }
  0x75   : > { %p1441_p5 = pnand %p1440_p2, %p1434_p12 }
  0x77   : > { %1444 = shalt.err (!%p1441_p5)
}
  0x78   : > { %1220 = dma.hbm_to_vmem [thread:$0]  (!%p1803_p6), %s2165_s7, 64, %s350_s26, [#allocation15]  }
  0x79   : > { %s2184_s2 = sld [smem:[#allocation25_spill]] }
  0x7f   : > { %s1445_s29 = scalar_lea.hbm %s2184_s2, 128 }
  0x80   : > { %p1446_p7 = scmp.ne.s32.totalorder %s2184_s2, %s1445_s29  ;;  %p1452_p1 = scmp.lt.u32.totalorder %s1445_s29, %s2184_s2 }
  0x82   : > { %p1448_p9 = pnand %p1446_p7, %p1819_p8 }
  0x84   : > { %p1449_p4 = pneg %p1448_p9 }
  0x86   : > { %p1454_p3 = pnand %p1452_p1, %p1449_p4 }
  0x88   : > { %1457 = shalt.err (!%p1454_p3)
}
  0x89   : > { %s1458_s19 = scalar_lea.vmem %s295_s27, 128  ;;  %p1466_p13 = scmp.lt.s32.totalorder %s295_s27, %s295_s27 }
  0x8a   : > { %p1459_p10 = scmp.ne.s32.totalorder %s295_s27, %s1458_s19  ;;  %p1467_p0 = scmp.lt.s32.totalorder %s1458_s19, %s1458_s19 }
  0x8c   : > { %p1461_p11 = pnand %p1459_p10, %p1819_p8  ;;  %p1468_p2 = por %p1467_p0, %p1466_p13 }
  0x8e   : > { %p1462_p12 = pneg %p1461_p11 }
  0x90   : > { %p1469_p5 = pnand %p1468_p2, %p1462_p12 }
  0x92   : > { %1472 = shalt.err (!%p1469_p5)
}
  0x93   : > { %1205 = dma.hbm_to_vmem [thread:$0]  (!%p1803_p6), %s2184_s2, 128, %s295_s27, [#allocation6]  }
  0x94   : > { %s1692_s9 = smov [#allocation10]   ;;  %s1693_s1 = smov [#allocation13]  }
  0x95   : > { %s316_s15 = sshll.u32 %s1692_s9, 4  ;;  %s338_s28 = sshll.u32 %s1693_s1, 4  ;;  %s317_s15 = int_to_ptr.vmem [resolvable:$true] %s316_s15  ;;  %s339_s28 = int_to_ptr.vmem [resolvable:$true] %s338_s28 }
  0x96   : > { %s1473_s23 = scalar_lea.hbm %s2162_s4, 64 }
  0x97   : > { %p1474_p7 = scmp.ne.s32.totalorder %s2162_s4, %s1473_s23  ;;  %p1480_p1 = scmp.lt.u32.totalorder %s1473_s23, %s2162_s4 }
  0x99   : > { %p1476_p9 = pnand %p1474_p7, %p1819_p8 }
  0x9b   : > { %p1477_p4 = pneg %p1476_p9 }
  0x9d   : > { %p1482_p3 = pnand %p1480_p1, %p1477_p4 }
  0x9f   : > { %1485 = shalt.err (!%p1482_p3)
}
  0xa0   : > { %s1486_s27 = scalar_lea.vmem %s317_s15, 64  ;;  %p1494_p13 = scmp.lt.s32.totalorder %s317_s15, %s317_s15 }
  0xa1   : > { %p1487_p10 = scmp.ne.s32.totalorder %s317_s15, %s1486_s27  ;;  %p1495_p0 = scmp.lt.s32.totalorder %s1486_s27, %s1486_s27 }
  0xa3   : > { %p1489_p11 = pnand %p1487_p10, %p1819_p8  ;;  %p1496_p2 = por %p1495_p0, %p1494_p13 }
  0xa5   : > { %p1490_p12 = pneg %p1489_p11 }
  0xa7   : > { %p1497_p5 = pnand %p1496_p2, %p1490_p12 }
  0xa9   : > { %1500 = shalt.err (!%p1497_p5)
}
  0xaa   : > { %1211 = dma.hbm_to_vmem [thread:$0]  (!%p1803_p6), %s2162_s4, 64, %s317_s15, [#allocation9]  }
  0xab   : > { %s1501_s20 = scalar_lea.hbm %s2164_s6, 64 }
  0xac   : > { %p1502_p7 = scmp.ne.s32.totalorder %s2164_s6, %s1501_s20  ;;  %p1508_p1 = scmp.lt.u32.totalorder %s1501_s20, %s2164_s6 }
  0xae   : > { %p1504_p9 = pnand %p1502_p7, %p1819_p8 }
  0xb0   : > { %p1505_p4 = pneg %p1504_p9 }
  0xb2   : > { %p1510_p3 = pnand %p1508_p1, %p1505_p4 }
  0xb4   : > { %1513 = shalt.err (!%p1510_p3)
}
  0xb5   : > { %s1514_s26 = scalar_lea.vmem %s339_s28, 64  ;;  %p1522_p13 = scmp.lt.s32.totalorder %s339_s28, %s339_s28 }
  0xb6   : > { %p1515_p10 = scmp.ne.s32.totalorder %s339_s28, %s1514_s26  ;;  %p1523_p0 = scmp.lt.s32.totalorder %s1514_s26, %s1514_s26 }
  0xb8   : > { %p1517_p11 = pnand %p1515_p10, %p1819_p8  ;;  %p1524_p2 = por %p1523_p0, %p1522_p13 }
  0xba   : > { %p1518_p12 = pneg %p1517_p11 }
  0xbc   : > { %p1525_p5 = pnand %p1524_p2, %p1518_p12 }
  0xbe   : > { %1528 = shalt.err (!%p1525_p5)
}
  0xbf   : > { %1217 = dma.hbm_to_vmem [thread:$0]  (!%p1803_p6), %s2164_s6, 64, %s339_s28, [#allocation12]  }
  0xc0   : > { %s1694_s24 = smov [#allocation16]   ;;  %s1529_s20 = scalar_lea.hbm %s2166_s8, 64 }
  0xc1   : > { %s360_s9 = sshll.u32 %s1694_s24, 4  ;;  %p1530_p7 = scmp.ne.s32.totalorder %s2166_s8, %s1529_s20  ;;  %s361_s9 = int_to_ptr.vmem [resolvable:$true] %s360_s9 }
  0xc2   : > { %p1536_p1 = scmp.lt.u32.totalorder %s1529_s20, %s2166_s8 }
  0xc3   : > { %p1532_p9 = pnand %p1530_p7, %p1819_p8 }
  0xc5   : > { %p1533_p4 = pneg %p1532_p9 }
  0xc7   : > { %p1538_p3 = pnand %p1536_p1, %p1533_p4 }
  0xc9   : > { %1541 = shalt.err (!%p1538_p3)
}
  0xca   : > { %s1542_s28 = scalar_lea.vmem %s361_s9, 64  ;;  %p1550_p13 = scmp.lt.s32.totalorder %s361_s9, %s361_s9 }
  0xcb   : > { %p1543_p10 = scmp.ne.s32.totalorder %s361_s9, %s1542_s28  ;;  %p1551_p0 = scmp.lt.s32.totalorder %s1542_s28, %s1542_s28 }
  0xcd   : > { %p1545_p11 = pnand %p1543_p10, %p1819_p8  ;;  %p1552_p2 = por %p1551_p0, %p1550_p13 }
  0xcf   : > { %p1546_p12 = pneg %p1545_p11 }
  0xd1   : > { %p1553_p5 = pnand %p1552_p2, %p1546_p12 }
  0xd3   : > { %1556 = shalt.err (!%p1553_p5)
}
  0xd4   : > { %1223 = dma.hbm_to_vmem [thread:$0]  (!%p1803_p6), %s2166_s8, 64, %s361_s9, [#allocation15]  }
  0xd5   : > { %s1092_s18 = sadd.s32 4294967294, %s1685_s14   ;;  %s41_s27 = sadd.s32 1, %s1681_s13 }
  0xd6   : > { %p43_p8 = scmp.ge.s32.totalorder %s41_s27, 2  ;;  %s50_s22 = sadd.s32 1, %s1673_s11 }
  0xd7   : > { %p57_p7 = scmp.ne.s32.totalorder %s1673_s11, %s1669_s10  ;;  %p58_p9 = scmp.eq.s32.totalorder %s1685_s14, 0 }
  0xd8   : > { %s2204_s27 = smov (%p43_p8, %s41_s27), 0  ;;  %p63_p1 = scmp.ne.s32.totalorder %s1669_s10, %s1665_s30 }
  0xd9   : > { %p1979_p4 = por %p58_p9, %p57_p7  ;;  %s45_s9 = ssub.s32 %s1681_s13, %s2204_s27 }
  0xda   : > { %s2186_s1 = sadd.s32 4294967295, %s1685_s14   ;;  %p48_p3 = scmp.eq.s32.totalorder %s45_s9, 0 }
  0xdb   : > { %p257_p6 = scmp.eq.s32.totalorder %s2186_s1, 1  ;;  %p2187_p10 = scmp.ne.s32.totalorder %s2178_s16, 0 }
  0xdc   : > { %p263_p13 = scmp.eq.s32.totalorder %s1092_s18, 1  ;;  %p1240_p2 = scmp.lt.s32.totalorder %s1685_s14, 2 }
  0xdd   : > { %p1991_p11 = por %p2187_p10, %p63_p1  ;;  %p1995_p12 = por %p257_p6, %p57_p7 }
  0xde   : > { %s2000_s23 = scalar_select %p48_p3, %s1673_s11, %s50_s22  }
  0xdf   : > { %s2189_s20 = scalar_select %p1995_p12, 1, 0 }
  0xe0   : > { %p2002_p0 = por %p263_p13, %p63_p1  ;;  %s371_s21 = sand.u32 1, %s1673_s11  }
  0xe1   : > { %s1104_s19 = sshll.u32 %s1681_s13, 6  ;;  %s1103_s28 = sshll.u32 %s371_s21, 2 }
  0xe2   : > { %s2190_s25 = scalar_select %p2002_p0, 1, 0 }
  0xe3   : > { %s2012_s9 = scalar_lea.hbm %s2158_s0, %s1104_s19  ;;  %s375_s18 = scalar_lea.vmem [#allocation2], %s1103_s28 }
  0xe4   : > { %s383_s22 = sshll.u32 %s375_s18, 4  ;;  %p2016_p5 = pnand %p1240_p2, %p1979_p4  ;;  %s2020_s22 = int_to_ptr.vmem [resolvable:$true] %s383_s22 }
  0xe5   : > { %s372_s2 = scalar_lea.sflag [#allocation3], %s371_s21  ;;  %s1557_s3 = scalar_lea.hbm %s2012_s9, 64 }
  0xe6   : > { %p1558_p8 = scmp.ne.s32.totalorder %s2012_s9, %s1557_s3  ;;  %p1559_p7 = pneg %p2016_p5 }
  0xe7   : > { %s1562_s24 = scalar_lea.hbm %s2158_s0, 128  ;;  %p1563_p4 = scmp.lt.u32.totalorder %s2012_s9, %s2158_s0 }
  0xe8   : > { %p1560_p9 = pnand %p1559_p7, %p1558_p8  ;;  %p1564_p6 = scmp.lt.u32.totalorder %s1562_s24, %s1557_s3 }
  0xe9   : > { %p1566_p10 = scmp.lt.u32.totalorder %s1557_s3, %s2012_s9 }
  0xea   : > { %p1561_p1 = pneg %p1560_p9  ;;  %p1565_p3 = por %p1564_p6, %p1563_p4 }
  0xec   : > { %p1567_p13 = por %p1566_p10, %p1565_p3 }
  0xee   : > { %p1568_p2 = pnand %p1567_p13, %p1561_p1 }
  0xf0   : > { %1571 = shalt.err (!%p1568_p2)
}
  0xf1   : > { %s1572_s21 = scalar_lea.vmem %s2020_s22, 64  ;;  %s1695_s18 = smov [#allocation2]  }
  0xf2   : > { %p1573_p8 = scmp.ne.s32.totalorder %s2020_s22, %s1572_s21  ;;  %s1577_s19 = sshll.u32 %s1695_s18, 4  ;;  %s1578_s19 = int_to_ptr.vmem [resolvable:$false] %s1577_s19 }
  0xf3   : > { %s1579_s28 = scalar_lea.vmem %s1578_s19, 128  ;;  %p1580_p12 = scmp.lt.s32.totalorder %s2020_s22, %s1578_s19 }
  0xf4   : > { %p1575_p9 = pnand %p1573_p8, %p1559_p7  ;;  %p1581_p4 = scmp.lt.s32.totalorder %s1579_s28, %s1572_s21 }
  0xf6   : > { %p1576_p0 = pneg %p1575_p9  ;;  %p1582_p6 = por %p1581_p4, %p1580_p12 }
  0xf8   : > { %p1583_p3 = pnand %p1582_p6, %p1576_p0 }
  0xfa   : > { %1586 = shalt.err (!%p1583_p3)
}
  0xfb   : > { %1227 = dma.hbm_to_vmem [thread:$0]  (!%p2016_p5), %s2012_s9, 64, %s2020_s22, %s372_s2  }
  0xfc   : > { %p2192_p1 = scmp.ne.s32.totalorder %s2179_s17, 0 }
  0xfd   : > { %s2050_s3 = sand.u32 (!%p2192_p1), 1, %s1669_s10  }
  0xfe   : > { %392 = sbr.rel (%p2192_p1) target bundleno = 1254 (0x4e6), region = 56  ;;  %s1106_s24 = sshll.u32 (!%p2192_p1), %s2050_s3, 2 }
  0xff   : > { %s395_s26 = scalar_lea.sflag (!%p2192_p1), [#allocation3], %s2050_s3  ;;  %s398_s15 = scalar_lea.vmem (!%p2192_p1), [#allocation2], %s1106_s24 }
 0x105   : > { %1640 = dma.done.wait (%p1991_p11), %s395_s26, 64  }
 0x106   : > { %1642 = vsyncadd (%p1991_p11), %s395_s26, 4294967232  ;;  %p2193_p12 = scmp.ne.s32.totalorder %s2178_s16, 0 }
 0x108   : > { %1644 = dma.done.wait (%p2193_p12), [#allocation6], 256  }
 0x109   : > { %1646 = vsyncadd (%p2193_p12), [#allocation6], 4294967040 }
 0x10a   : > { %1648 = dma.done.wait (%p2193_p12), [#allocation9], 128  }
 0x10b   : > { %1650 = vsyncadd (%p2193_p12), [#allocation9], 4294967168 }
 0x10c   : > { %1652 = dma.done.wait (%p2193_p12), [#allocation12], 192  }
 0x10d   : > { %1654 = vsyncadd (%p2193_p12), [#allocation12], 4294967104 }
 0x10e   : > { %1656 = dma.done.wait (%p2193_p12), [#allocation15], 128  }
 0x10f   : > { %1658 = vsyncadd (%p2193_p12), [#allocation15], 4294967168  ;;  %v1696_v0 = vmov 0.0   ;;  %vm1697_vm0 = vmmov 0   ;;  %v1698_v1 = vmov 0   ;;  %v1699_v2 = vmov 1  }
 0x110   : > { %1138 = vmatprep.subr.mxu0 %v1696_v0  ;;  %1140 = vmatprep.mubr.msk.f32.mxu0 %vm1697_vm0, %v1696_v0  ;;  %vm473_vm1 = vcmask 1043456   ;;  %vm469_vm2 = vcmask 31744   ;;  %v466_v3 = vld [vmem:[#allocation7] sm:$0xff]  ;;  %v2082_v4 = vld [vmem:[%s398_s15] sm:$0xf]  ;;  %v468_v5 = vld [vmem:[#allocation5] sm:$0xff] }
 0x111   : > { %1314 = vset.pattern.permute.xlu0 %v1698_v1  ;;  %1315 = vset.pattern.permute.xlu1 %v1699_v2  ;;  %s1700_s2 = smov 127   ;;  %v580_v6 = vld [vmem:[#allocation10] sm:$0xf]  ;;  %v1701_v7 = vmov 2   ;;  %v467_v8 = vld [vmem:[#allocation14] sm:$0xf] }
 0x112   : > { %1143 = vmatprep.subr.mxu1 %v1696_v0  ;;  %1145 = vmatprep.mubr.msk.f32.mxu1 %vm1697_vm0, %v1696_v0  ;;  %v1702_v11 = vmov 4   ;;  %v579_v28 = vld [vmem:[#allocation8] sm:$0xf]  ;;  %vm586_vm3 = vcmask 64512   ;;  %v1703_v29 = vmov 5   ;;  %v666_v40 = vld [vmem:[#allocation11] sm:$0xff] }
 0x113   : > { %564 = vrot.lane.b32.xlu0 %v466_v3, %s1700_s2  ;;  %1139 = vmatpush3.msk.msra.mxu0 %vm473_vm1, %v2082_v4  ;;  %v833_v41 = vld [vmem:[#allocation16] sm:$0xf]  ;;  %v748_v47 = vld [vmem:[#allocation13] sm:$0xf]  ;;  %s1125_s16 = sshll.u32 %s1677_s12, 6  ;;  %s464_s17 = scalar_lea.vmem [#allocation17], %s1106_s24 }
 0x114   : > { %1141 = vmatmul.mubr.msk.f32.vlgmr.msra.gmra.mrb[0].mxu0 %vm469_vm2, %v468_v5  ;;  %554 = vperm.xlu1 %1315, %v466_v3   ;;  %s935_s29 = sshll.u32 %s464_s17, 4  ;;  %s2194_s1 = sld [smem:[#allocation27_spill]]  ;;  %s2111_s29 = int_to_ptr.vmem [resolvable:$true] %s935_s29 }
 0x115   : > { %1148 = vmatprep.subr.mxu0 %v1696_v0  ;;  %1150 = vmatprep.mubr.msk.f32.mxu0 %vm1697_vm0, %v1696_v0  ;;  %s921_s18 = scalar_lea.sflag [#allocation4], %s2050_s3  ;;  %s1587_s19 = scalar_lea.vmem %s2111_s29, 64 }
 0x116   : > { %p1588_p11 = scmp.ne.s32.totalorder %s2111_s29, %s1587_s19  ;;  %p2195_p0 = scmp.ne.s32.totalorder %s2189_s20, 0 }
 0x117   : > { %549 = vperm.xlu0 %1314, %v466_v3   ;;  %s1704_s12 = smov [#allocation17]  }
 0x118   : > { %1316 = vset.pattern.permute.xlu1 %v1701_v7  ;;  %p1589_p5 = pnand %p1588_p11, %p2195_p0  ;;  %s1591_s28 = sshll.u32 %s1704_s12, 4  ;;  %s1592_s28 = int_to_ptr.vmem [resolvable:$false] %s1591_s28 }
 0x119   : > { %s1593_s24 = scalar_lea.vmem %s1592_s28, 128  ;;  %p1594_p10 = scmp.lt.s32.totalorder %s2111_s29, %s1592_s28 }
 0x11a   : > { %s2109_s21 = scalar_lea.hbm %s2194_s1, %s1125_s16  ;;  %p1590_p7 = pneg %p1589_p5 }
 0x11b   : > { %583 = vperm.xlu0 %1314, %v580_v6   ;;  %p1595_p13 = scmp.lt.s32.totalorder %s1593_s24, %s1587_s19 }
 0x11d   : > { %p1596_p2 = por %p1595_p13, %p1594_p10 }
 0x11f   : > { %824 = vperm.xlu0 %1314, %v467_v8   ;;  %p1597_p8 = pnand %p1596_p2, %p1590_p7 }
 0x123   : > { %1320 = vset.pattern.permute.xlu0 %v1701_v7 }
 0x124   : > { %909 = vperm.xlu0 %1320, %v467_v8  }
 0x185   : > { %v565_v9 = vpop.permute.xlu0 %564 }
 0x186   : > { %v567_v10 = vmul.f32 %v565_v9, %v466_v3 }
 0x188   : > { %570 = vperm.xlu1 %1316, %v567_v10  }
 0x18c   : > { %1317 = vset.pattern.permute.xlu1 %v1702_v11 }
 0x18d   : > { %575 = vperm.xlu1 %1317, %v466_v3  }
 0x191   : > { %1318 = vset.pattern.permute.xlu1 %v1703_v29 }
 0x192   : > { %668 = vperm.xlu1 %1318, %v466_v3  }
 0x193   : > { %v555_v12 = vpop.permute.xlu1 %554 }
 0x196   : > { %v550_v13 = vpop.permute.xlu0 %549  ;;  %1319 = vset.pattern.permute.xlu1 %v1699_v2 }
 0x197   : > { %829 = vperm.xlu1 %1319, %v467_v8  }
 0x19a   : > { %v584_v30 = vpop.permute.xlu0 %583 }
 0x19e   : > { %v825_v50 = vpop.permute.xlu0 %824 }
 0x1a3   : > { %v910_v56 = vpop.permute.xlu0 %909 }
 0x1e7   : > { %v543_v14 = vpop.f32.mrb[0].mxu0 }
 0x1e8   : > { %v552_v15 = vmul.f32 %v550_v13, %v543_v14  ;;  %v1142_v16 = vpop.f32.mrb[1].mxu0 }
 0x1ea   : > { %v557_v17 = vadd.f32 %v555_v12, %v552_v15 }
 0x1ec   : > { %v558_v18 = vsub.f32 0.0, %v557_v17 }
 0x1ee   : > { %v559_v19 = vmul.f32 1.442695, %v558_v18 }
 0x1f0   : > { %1321 = vpow2.f32 %v559_v19 }
 0x1fa   : > { %v1322_v20 = vpop.eup %1321 }
 0x1fb   : > { %v561_v21 = vadd.f32 1.0, %v1322_v20 }
 0x1fd   : > { %1323 = vrcp.f32 %v561_v21 }
 0x207   : > { %v1324_v22 = vpop.eup %1323  ;;  %v571_v23 = vpop.permute.xlu1 %570 }
 0x208   : > { %v563_v24 = vmul.f32 %v1324_v22, %v557_v17 }
 0x20a   : > { %v573_v25 = vmul.f32 %v571_v23, %v563_v24 }
 0x20c   : > { %v576_v26 = vpop.permute.xlu1 %575 }
 0x20d   : > { %v578_v27 = vadd.f32 %v576_v26, %v573_v25 }
 0x20f   : > { %1144 = vmatpush3.msra.mxu1 %v578_v27 }
 0x210   : > { %1146 = vmatmul.mubr.msk.f32.vlgmr.msra.gmra.mrb[0].mxu1 %vm586_vm3, %v579_v28  ;;  %1153 = vmatprep.subr.mxu1 %v1696_v0 }
 0x211   : > { %1155 = vmatprep.mubr.msk.f32.mxu1 %vm1697_vm0, %v1696_v0  ;;  %v669_v42 = vpop.permute.xlu1 %668 }
 0x216   : > { %v830_v52 = vpop.permute.xlu1 %829 }
 0x2e3   : > { %v656_v31 = vpop.f32.mrb[0].mxu1 }
 0x2e4   : > { %v657_v32 = vadd.f32 %v656_v31, %v584_v30  ;;  %v1147_v33 = vpop.f32.mrb[1].mxu1 }
 0x2e6   : > { %v660_v34 = vsub.f32 0.0, %v657_v32 }
 0x2e8   : > { %v661_v35 = vmul.f32 1.442695, %v660_v34 }
 0x2ea   : > { %1325 = vpow2.f32 %v661_v35 }
 0x2f4   : > { %v1326_v36 = vpop.eup %1325 }
 0x2f5   : > { %v663_v37 = vadd.f32 1.0, %v1326_v36 }
 0x2f7   : > { %1327 = vrcp.f32 %v663_v37 }
 0x301   : > { %v1328_v38 = vpop.eup %1327 }
 0x302   : > { %v665_v39 = vmul.f32 %v1328_v38, %v657_v32 }
 0x304   : > { %1149 = vmatpush3.msk.msra.mxu0 %vm473_vm1, %v665_v39 }
 0x305   : > { %1151 = vmatmul.mubr.msk.f32.vlgmr.msra.gmra.mrb[2].mxu0 %vm469_vm2, %v666_v40  ;;  %1158 = vmatprep.subr.mxu0 %v1696_v0 }
 0x306   : > { %1159 = vmatpush3.msk.msra.mxu0 %vm473_vm1, %v2082_v4  ;;  %1160 = vmatprep.mubr.msk.f32.mxu0 %vm1697_vm0, %v1696_v0 }
 0x309   : > { %1161 = vmatmul.mubr.msk.f32.vlgmr.msra.gmra.mrb[4].mxu0 %vm469_vm2, %v833_v41 }
 0x3d8   : > { %v743_v43 = vpop.f32.mrb[2].mxu0 }
 0x3d9   : > { %v744_v44 = vadd.f32 %v743_v43, %v669_v42  ;;  %v1152_v45 = vpop.f32.mrb[3].mxu0 }
 0x3db   : > { %v747_v46 = vadd.f32 %v744_v44, %v578_v27 }
 0x3dc   : > { %v903_v48 = vpop.f32.mrb[4].mxu0 }
 0x3dd   : > { %1154 = vmatpush3.msra.mxu1 %v747_v46  ;;  %v1162_v49 = vpop.f32.mrb[5].mxu0 }
 0x3de   : > { %1156 = vmatmul.mubr.msk.f32.vlgmr.msra.gmra.mrb[2].mxu1 %vm586_vm3, %v748_v47 }
 0x4b1   : > { %v818_v51 = vpop.f32.mrb[2].mxu1 }
 0x4b2   : > { %v827_v53 = vmul.f32 %v825_v50, %v818_v51  ;;  %v1157_v54 = vpop.f32.mrb[3].mxu1 }
 0x4b4   : > { %v832_v55 = vadd.f32 %v830_v52, %v827_v53 }
 0x4b6   : > { %v907_v57 = vadd.f32 %v903_v48, %v832_v55 }
 0x4b8   : > { %v912_v58 = vadd.f32 %v910_v56, %v907_v57 }
 0x4ba   : > { %v913_v59 = vsub.f32 0.0, %v912_v58 }
 0x4bc   : > { %v914_v60 = vmul.f32 1.442695, %v913_v59 }
 0x4be   : > { %1329 = vpow2.f32 %v914_v60 }
 0x4c8   : > { %v1330_v61 = vpop.eup %1329 }
 0x4c9   : > { %v916_v62 = vadd.f32 1.0, %v1330_v61 }
 0x4cb   : > { %1331 = vrcp.f32 %v916_v62 }
 0x4d5   : > { %v1332_v63 = vpop.eup %1331 }
 0x4d6   : > { %v918_v0 = vmul.f32 %v1332_v63, %v912_v58 }
 0x4d8   : > { %919 = vst [vmem:[%s464_s17] sm:$0xf] %v918_v0 }
 0x4d9   : > { %1600 = shalt.err (!%p1597_p8)
}
 0x4da   : > { %s1601_s3 = scalar_lea.hbm %s2109_s21, 64  ;;  %s1605_s2 = scalar_lea.hbm %s2194_s1, 128 }
 0x4db   : > { %p1602_p9 = scmp.ne.s32.totalorder %s2109_s21, %s1601_s3  ;;  %p1606_p3 = scmp.lt.u32.totalorder %s2109_s21, %s2194_s1 }
 0x4dc   : > { %p1607_p1 = scmp.lt.u32.totalorder %s1605_s2, %s1601_s3  ;;  %p1609_p11 = scmp.lt.u32.totalorder %s1601_s3, %s2109_s21 }
 0x4dd   : > { %p1603_p4 = pnand %p1602_p9, %p2195_p0 }
 0x4de   : > { %p1608_p12 = por %p1607_p1, %p1606_p3 }
 0x4df   : > { %p1604_p6 = pneg %p1603_p4 }
 0x4e0   : > { %p1610_p5 = por %p1609_p11, %p1608_p12 }
 0x4e2   : > { %p1611_p7 = pnand %p1610_p5, %p1604_p6 }
 0x4e4   : > { %1614 = shalt.err (!%p1611_p7)
}
 0x4e5   : > { %1197 = dma.vmem_to_hbm [thread:$0]  (%p2195_p0), %s2111_s29, 64, %s2109_s21, %s921_s18  }
 0x4e6 PF: > { %s947_s9 = sand.u32 1, %s1665_s30   ;;  %p2196_p10 = scmp.ne.s32.totalorder %s2190_s25, 0 }
 0x4e7   : > { %p2197_p13 = scmp.ge.s32.totalorder %s1685_s14, 2  ;;  %s948_s22 = scalar_lea.sflag [#allocation4], %s947_s9 }
 0x4e9   : > { %p1229_p2 = pnand %p2197_p13, %p2196_p10 }
 0x4eb   : > { %1660 = dma.done.wait (!%p1229_p2), %s948_s22, 64  }
 0x4ec   : > { %1662 = vsyncadd (!%p1229_p2), %s948_s22, 4294967232  ;;  %s29_s14 = sadd.s32 1, %s1685_s14   ;;  %s2198_s30 = smov %s1669_s10 }
 0x4ed   : > { %p26_p8 = scmp.ge.s32.totalorder %s29_s14, 4   ;;  %s2199_s10 = smov %s1673_s11 }
 0x4ee   : > { %s2200_s11 = smov %s2000_s23  ;;  %s2201_s12 = smov %s1681_s13 }
 0x4ef   : > { %s2202_s13 = smov %s2204_s27  ;;  %28 = sbr.rel (!%p26_p8) target bundleno = 15 (0xf), region = 133 }
 0x4f6   :  { %953 = vsyncpa [#allocation3], 1 }
 0x4f7   :  { %955 = vsyncpa [#allocation3 + $0x1], 1 }
 0x4f8   :  { %956 = vsyncpa [#allocation6], 1 }
 0x4f9   :  { %957 = vsyncpa [#allocation9], 1 }
 0x4fa   :  { %958 = vsyncpa [#allocation12], 1 }
 0x4fb   :  { %959 = vsyncpa [#allocation15], 1 }
 0x4fc   :  { %960 = vsyncpa [#allocation4], 1 }
 0x4fd   :  { %962 = vsyncpa [#allocation4 + $0x1], 1 }

</bundles_post_ra>
